<compile_context>
chip_gen: v6e
topology: v6e:2x2x1
jax: 0.10.0
libtpu: 0.0.40
codegen_flags: <defaults>
</compile_context>

<pallas_src>
import jax
import jax.numpy as jnp
from jax.experimental import pallas as pl
from jax.experimental.pallas import tpu as pltpu


def aam_kernel(cur_ref, add_ref, w1_ref, w2_ref, out_ref):
    """One batch element.
       cur/add/out: (C, HW)   w1: (Ch, C)   w2: (C, Ch)   (all VMEM, f32)."""
    x = cur_ref[...]                                          # (C, HW) lane-dense

    # ---- global average / max pooling over the spatial (lane) axis ----
    hw = x.shape[1]
    avg = jnp.sum(x, axis=1, keepdims=True) * (1.0 / hw)      # (C, 1)
    mx = jnp.max(x, axis=1, keepdims=True)                    # (C, 1)

    # ---- shared squeeze/excite MLP on both pooled vectors (tiny matmuls) ----
    w1 = w1_ref[...]                                          # (Ch, C)
    w2 = w2_ref[...]                                          # (C, Ch)
    h_avg = jnp.maximum(
        jnp.dot(w1, avg, preferred_element_type=jnp.float32), 0.0)   # (Ch, 1)
    h_max = jnp.maximum(
        jnp.dot(w1, mx, preferred_element_type=jnp.float32), 0.0)    # (Ch, 1)
    logit = (jnp.dot(w2, h_avg, preferred_element_type=jnp.float32)
             + jnp.dot(w2, h_max, preferred_element_type=jnp.float32))  # (C, 1)

    # ---- sigmoid gate (exp on the EUP; only C values, not a full tile) ----
    att = 1.0 / (1.0 + jnp.exp(-logit))                       # (C, 1)

    # ---- single full-tile pass: gate current feature, add skip feature ----
    out_ref[...] = x * att + add_ref[...]                     # (C, HW) unmasked vst


def aam_forward(cur_nchw, add_nchw, w1, w2):
    """cur/add: (N, C, H, W) f32 -> (N, C, H, W) f32."""
    n, c, h, w = cur_nchw.shape
    hw = h * w
    ch = w1.shape[0]

    cur_f = cur_nchw.reshape(n, c, hw)        # pure reshape, no transpose
    add_f = add_nchw.reshape(n, c, hw)

    out = pl.pallas_call(
        aam_kernel,
        out_shape=jax.ShapeDtypeStruct((n, c, hw), jnp.float32),
        grid=(n,),
        in_specs=[
            pl.BlockSpec((None, c, hw), lambda i: (i, 0, 0)),   # cur (squeeze N)
            pl.BlockSpec((None, c, hw), lambda i: (i, 0, 0)),   # add (squeeze N)
            pl.BlockSpec((ch, c), lambda i: (0, 0)),            # fc1 weight
            pl.BlockSpec((c, ch), lambda i: (0, 0)),            # fc2 weight
        ],
        out_specs=pl.BlockSpec((None, c, hw), lambda i: (i, 0, 0)),
        compiler_params=pltpu.CompilerParams(
            dimension_semantics=("parallel",)),
    )(cur_f, add_f, w1, w2)

    return out.reshape(n, c, h, w)


aam_forward = jax.jit(aam_forward)


def init_params(key, in_planes, ratio=4):
    """Match AAM._initialize_weights(): conv weights ~ N(0, 0.01), no bias."""
    k1, k2 = jax.random.split(key)
    hidden = in_planes // ratio
    # PyTorch layouts: fc1.weight (hidden, C, 1, 1) -> (hidden, C)
    #                  fc2.weight (C, hidden, 1, 1) -> (C, hidden)
    w1 = jax.random.normal(k1, (hidden, in_planes), jnp.float32) * 0.01
    w2 = jax.random.normal(k2, (in_planes, hidden), jnp.float32) * 0.01
    return w1, w2


def aam_reference(cur, add, w1, w2):
    """Pure-JAX reference of the same forward pass (sanity check)."""
    avg = cur.mean(axis=(2, 3))                # (N, C)
    mx = cur.max(axis=(2, 3))                  # (N, C)

    def mlp(v):
        h = jnp.maximum(v @ w1.T, 0.0)         # (N, hidden)
        return h @ w2.T                        # (N, C)

    att = jax.nn.sigmoid(mlp(avg) + mlp(mx))[:, :, None, None]
    return cur * att + add


if __name__ == "__main__":
    N, C, H, W = 2, 16, 16, 16                 # in_planes=16, ratio=4 -> hidden=4
    key = jax.random.PRNGKey(0)
    kc, ka, kp = jax.random.split(key, 3)

    cur = jax.random.normal(kc, (N, C, H, W), jnp.float32)
    add = jax.random.normal(ka, (N, C, H, W), jnp.float32)
    w1, w2 = init_params(kp, C, ratio=4)

    out = aam_forward(cur, add, w1, w2)
    out = jax.block_until_ready(out)

    ref = aam_reference(cur, add, w1, w2)
    assert out.shape == (N, C, H, W)
    assert jnp.allclose(out, ref, atol=1e-5, rtol=1e-5), "mismatch vs JAX reference"

    print("KERNEL_OK")
</pallas_src>

<mosaic_0001>
module attributes {stable_mosaic.version = 11 : i64} {
  func.func @aam_kernel(%arg0: i32, %arg1: memref<1x16x256xf32, #tpu.memory_space<vmem>>, %arg2: memref<1x16x256xf32, #tpu.memory_space<vmem>>, %arg3: memref<4x16xf32, #tpu.memory_space<vmem>>, %arg4: memref<16x4xf32, #tpu.memory_space<vmem>>, %arg5: memref<1x16x256xf32, #tpu.memory_space<vmem>>) attributes {dimension_semantics = [#tpu.dimension_semantics<parallel>], iteration_bounds = array<i64: 2>, scalar_prefetch = 0 : i64, scratch_operands = 0 : i64, tpu.core_type = #tpu.core_type<tc>, window_params = [{transform_indices = @transform_0, window_bounds = array<i64: 1, 16, 256>}, {transform_indices = @transform_1, window_bounds = array<i64: 1, 16, 256>}, {pipeline_mode = #tpu.pipeline_mode<synchronous>, transform_indices = @transform_2, window_bounds = array<i64: 4, 16>}, {pipeline_mode = #tpu.pipeline_mode<synchronous>, transform_indices = @transform_3, window_bounds = array<i64: 16, 4>}, {transform_indices = @transform_4, window_bounds = array<i64: 1, 16, 256>}]} {
    %c0 = arith.constant 0 : index
    %c0_0 = arith.constant 0 : index
    %c0_1 = arith.constant 0 : index
    %0 = vector.load %arg1[%c0, %c0_0, %c0_1] : memref<1x16x256xf32, #tpu.memory_space<vmem>>, vector<1x16x256xf32>
    %1 = vector.shape_cast %0 : vector<1x16x256xf32> to vector<16x256xf32>
    %cst = arith.constant dense<0.000000e+00> : vector<16xf32>
    %2 = vector.multi_reduction <add>, %1, %cst [1] : vector<16x256xf32> to vector<16xf32>
    %3 = vector.shape_cast %2 : vector<16xf32> to vector<16x1xf32>
    %cst_2 = arith.constant 3.906250e-03 : f32
    %4 = vector.broadcast %cst_2 : f32 to vector<16x1xf32>
    %5 = arith.mulf %3, %4 : vector<16x1xf32>
    %cst_3 = arith.constant dense<0xFF800000> : vector<16xf32>
    %6 = vector.multi_reduction <maximumf>, %1, %cst_3 [1] : vector<16x256xf32> to vector<16xf32>
    %7 = vector.shape_cast %6 : vector<16xf32> to vector<16x1xf32>
    %c0_4 = arith.constant 0 : index
    %c0_5 = arith.constant 0 : index
    %8 = vector.load %arg3[%c0_4, %c0_5] : memref<4x16xf32, #tpu.memory_space<vmem>>, vector<4x16xf32>
    %c0_6 = arith.constant 0 : index
    %c0_7 = arith.constant 0 : index
    %9 = vector.load %arg4[%c0_6, %c0_7] : memref<16x4xf32, #tpu.memory_space<vmem>>, vector<16x4xf32>
    %cst_8 = arith.constant dense<0.000000e+00> : vector<4x1xf32>
    %10 = tpu.matmul %8, %5, %cst_8 {dimension_numbers = #tpu.dot_dimension_numbers<[1], [0], [0], [1], [0, 0, 1, 1], [], []>} : vector<4x16xf32>, vector<16x1xf32>, vector<4x1xf32> -> vector<4x1xf32>
    %cst_9 = arith.constant 0.000000e+00 : f32
    %11 = vector.broadcast %cst_9 : f32 to vector<4x1xf32>
    %12 = arith.maximumf %10, %11 : vector<4x1xf32>
    %cst_10 = arith.constant dense<0.000000e+00> : vector<4x1xf32>
    %13 = tpu.matmul %8, %7, %cst_10 {dimension_numbers = #tpu.dot_dimension_numbers<[1], [0], [0], [1], [0, 0, 1, 1], [], []>} : vector<4x16xf32>, vector<16x1xf32>, vector<4x1xf32> -> vector<4x1xf32>
    %cst_11 = arith.constant 0.000000e+00 : f32
    %14 = vector.broadcast %cst_11 : f32 to vector<4x1xf32>
    %15 = arith.maximumf %13, %14 : vector<4x1xf32>
    %cst_12 = arith.constant dense<0.000000e+00> : vector<16x1xf32>
    %16 = tpu.matmul %9, %12, %cst_12 {dimension_numbers = #tpu.dot_dimension_numbers<[1], [0], [0], [1], [0, 0, 1, 1], [], []>} : vector<16x4xf32>, vector<4x1xf32>, vector<16x1xf32> -> vector<16x1xf32>
    %cst_13 = arith.constant dense<0.000000e+00> : vector<16x1xf32>
    %17 = tpu.matmul %9, %15, %cst_13 {dimension_numbers = #tpu.dot_dimension_numbers<[1], [0], [0], [1], [0, 0, 1, 1], [], []>} : vector<16x4xf32>, vector<4x1xf32>, vector<16x1xf32> -> vector<16x1xf32>
    %18 = arith.addf %16, %17 : vector<16x1xf32>
    %cst_14 = arith.constant 0.000000e+00 : f32
    %19 = vector.broadcast %cst_14 : f32 to vector<16x1xf32>
    %20 = arith.subf %19, %18 : vector<16x1xf32>
    %21 = math.exp %20 : vector<16x1xf32>
    %cst_15 = arith.constant 1.000000e+00 : f32
    %22 = vector.broadcast %cst_15 : f32 to vector<16x1xf32>
    %23 = arith.addf %22, %21 : vector<16x1xf32>
    %cst_16 = arith.constant 1.000000e+00 : f32
    %24 = vector.broadcast %cst_16 : f32 to vector<16x1xf32>
    %25 = arith.divf %24, %23 : vector<16x1xf32>
    %26 = vector.broadcast %25 : vector<16x1xf32> to vector<16x256xf32>
    %27 = arith.mulf %1, %26 : vector<16x256xf32>
    %c0_17 = arith.constant 0 : index
    %c0_18 = arith.constant 0 : index
    %c0_19 = arith.constant 0 : index
    %28 = vector.load %arg2[%c0_17, %c0_18, %c0_19] : memref<1x16x256xf32, #tpu.memory_space<vmem>>, vector<1x16x256xf32>
    %29 = vector.shape_cast %28 : vector<1x16x256xf32> to vector<16x256xf32>
    %30 = arith.addf %27, %29 : vector<16x256xf32>
    %c0_20 = arith.constant 0 : index
    %c0_21 = arith.constant 0 : index
    %c0_22 = arith.constant 0 : index
    %31 = vector.load %arg5[%c0_20, %c0_21, %c0_22] : memref<1x16x256xf32, #tpu.memory_space<vmem>>, vector<1x16x256xf32>
    %32 = vector.shape_cast %31 : vector<1x16x256xf32> to vector<16x256xf32>
    %33 = vector.shape_cast %30 : vector<16x256xf32> to vector<1x16x256xf32>
    tpu.vector_store %arg5[%c0_20, %c0_21, %c0_22], %33 {strides = array<i32>} : memref<1x16x256xf32, #tpu.memory_space<vmem>>, vector<1x16x256xf32>,
    return
  }
  func.func @transform_0(%arg0: i32) -> (i32, i32, i32) {
    %c0_i32 = arith.constant 0 : i32
    %c0_i32_0 = arith.constant 0 : i32
    %c0_i32_1 = arith.constant 0 : i32
    return %arg0, %c0_i32, %c0_i32_0 : i32, i32, i32
  }
  func.func @transform_1(%arg0: i32) -> (i32, i32, i32) {
    %c0_i32 = arith.constant 0 : i32
    %c0_i32_0 = arith.constant 0 : i32
    %c0_i32_1 = arith.constant 0 : i32
    return %arg0, %c0_i32, %c0_i32_0 : i32, i32, i32
  }
  func.func @transform_2(%arg0: i32) -> (i32, i32) {
    %c0_i32 = arith.constant 0 : i32
    %c0_i32_0 = arith.constant 0 : i32
    %c0_i32_1 = arith.constant 0 : i32
    return %c0_i32, %c0_i32_0 : i32, i32
  }
  func.func @transform_3(%arg0: i32) -> (i32, i32) {
    %c0_i32 = arith.constant 0 : i32
    %c0_i32_0 = arith.constant 0 : i32
    %c0_i32_1 = arith.constant 0 : i32
    return %c0_i32, %c0_i32_0 : i32, i32
  }
  func.func @transform_4(%arg0: i32) -> (i32, i32, i32) {
    %c0_i32 = arith.constant 0 : i32
    %c0_i32_0 = arith.constant 0 : i32
    %c0_i32_1 = arith.constant 0 : i32
    return %arg0, %c0_i32, %c0_i32_0 : i32, i32, i32
  }
}

</mosaic_0001>

<bundles_post_ra>
// kernel: aam_forward.1
= control target key start
LH: loop header
LB: loop body
LE: loop exit
PB: predicated region body
PF: predicated region fallthrough
CT: control target
= control target key end

     0   :  { %s771_s15 = smov 0   ;;  %s829_s0 = inlined_call_operand.vmem [shape: f32[2,16,256], index: 0, kind: input, shape index: {}]   ;;  %s830_s1 = inlined_call_operand.vmem [shape: f32[2,16,256], index: 1, kind: input, shape index: {}]   ;;  %s831_s2 = inlined_call_operand.vmem [shape: f32[4,16], index: 2, kind: input, shape index: {}]   ;;  %s832_s3 = inlined_call_operand.vmem [shape: f32[16,4], index: 3, kind: input, shape index: {}]   ;;  %s833_s4 = inlined_call_operand.vmem [shape: f32[2,16,256], index: 4, kind: output, shape index: {}]  }
   0x1 LB: > { %s654_s16 = sadd.s32 4294967295, %s741_s15   ;;  %p658_p0 = scmp.ge.s32.totalorder %s741_s15, 1  ;;  %s741_s15 = sphi %s771_s15, %s14_s15  }
   0x2   : > { %p172_p1 = scmp.lt.s32.totalorder %s741_s15, 3 }
   0x4   : > { %p173_p2 = pnand %p658_p0, %p172_p1 }
   0x5   : > { %p203_p3 = scmp.lt.s32.totalorder (!%p173_p2), %s654_s16, 1 }
   0x6   : > { %176 = sbr.rel (%p173_p2) target bundleno = 719 (0x2cf), region = 36 }
   0xb   : > { %s835_s16 = smov (!%p203_p3, %s654_s16), 1  ;;  %v743_v8 = vmov 0.0   ;;  %vm744_vm0 = vmmov 0   ;;  %v236_v12 = vld [vmem:[%s831_s2] sm:$0xf]  ;;  %vm239_vm1 = vcmask 130048  }
   0xc   : > { %s779_s17 = sshll.u32 %s835_s16, 5  ;;  %690 = vmatprep.subr.mxu0 %v743_v8  ;;  %697 = vmatprep.subr.mxu1 %v743_v8  ;;  %v237_v16 = vld [vmem:[%s832_s3] sm:$0xff]  ;;  %vm385_vm2 = vcmask 31744   ;;  %vm392_vm3 = vcmask 1043456   ;;  %v238_v21 = vld [vmem:[%s832_s3 + $0x8] sm:$0xff]  ;;  %v745_v24 = vmov 0  }
   0xd   : > { %s207_s20 = scalar_lea.vmem %s829_s0, %s779_s17  ;;  %701 = vmatprep.mubr.msk.f32.mxu1 %vm744_vm0, %v743_v8  ;;  %694 = vmatprep.mubr.msk.f32.mxu0 %vm744_vm0, %v743_v8  ;;  %s212_s29 = scalar_lea.vmem %s830_s1, %s779_s17 }
   0xe   : > { %v785_v0 = vld [vmem:[%s207_s20 + $0x10] sm:$0xff]  ;;  %v787_v1 = vld [vmem:[%s207_s20 + $0x18] sm:$0xff]  ;;  %v789_v2 = vld [vmem:[%s207_s20] sm:$0xff]  ;;  %726 = vset.pattern.permute.xlu1 %v745_v24  ;;  %725 = vset.pattern.permute.xlu0 %v745_v24  ;;  %s217_s6 = scalar_lea.vmem %s833_s4, %s779_s17 }
   0xf   : > { %v233_v3 = vmax.f32 %v785_v0, %v787_v1  ;;  %v225_v4 = vadd.f32 %v787_v1, %v785_v0  ;;  %v795_v5 = vld [vmem:[%s207_s20 + $0x8] sm:$0xff]  ;;  %v577_v41 = vld [vmem:[%s212_s29 + $0x10] sm:$0xff]  ;;  %v578_v42 = vld [vmem:[%s212_s29 + $0x18] sm:$0xff] }
  0x10   : > { %v230_v6 = vmax.f32 %v789_v2, %v795_v5  ;;  %v222_v7 = vadd.f32 %v795_v5, %v789_v2  ;;  %v575_v46 = vld [vmem:[%s212_s29] sm:$0xff]  ;;  %v576_v47 = vld [vmem:[%s212_s29 + $0x8] sm:$0xff] }
  0x11   : > { %234 = vmax.xlane.f32.xlu1 %v233_v3  ;;  %226 = vadd.xlane.f32.xlu0 %v225_v4 }
  0x15   : > { %231 = vmax.xlane.f32.xlu1 %v230_v6  ;;  %223 = vadd.xlane.f32.xlu0 %v222_v7 }
  0x9a   : > { %v235_v9 = vpop.xlane.xlu1 %234  ;;  %v227_v10 = vpop.xlane.xlu0 %226 }
  0x9b   : > { %v229_v11 = vmul.f32 0.00390625, %v227_v10  ;;  %698 = vmatpush3.msra.mxu1 %v235_v9 }
  0x9c   : > { %699 = vmatprep.subr.mxu1 %v743_v8 }
  0x9d   : > { %691 = vmatpush3.msra.mxu0 %v229_v11 }
  0x9e   : > { %v232_v13 = vpop.xlane.xlu1 %231  ;;  %v224_v14 = vpop.xlane.xlu0 %223  ;;  %692 = vmatprep.subr.mxu0 %v743_v8 }
  0x9f   : > { %v228_v15 = vmul.f32 0.00390625, %v224_v14  ;;  %700 = vmatpush3.msra.mxu1 %v232_v13 }
  0xa0   : > { %702 = vmatmul.mubr.msk.f32.vlgmr.msra.gmra.mxu1 %vm239_vm1, %v236_v12 }
  0xa1   : > { %693 = vmatpush3.msra.mxu0 %v228_v15  ;;  %711 = vmatprep.mubr.msk.f32.mxu1 %vm385_vm2, %v237_v16 }
  0xa2   : > { %695 = vmatmul.mubr.msk.f32.vlgmr.msra.gmra.mxu0 %vm239_vm1, %v236_v12 }
  0xa3   : > { %706 = vmatprep.mubr.msk.f32.mxu0 %vm385_vm2, %v237_v16 }
 0x160   : > { %v380_v17 = vpop.f32.mrf.mxu1 }
 0x161   : > { %v384_v18 = vmax.f32 %v380_v17, 0.0 }
 0x162   : > { %v309_v19 = vpop.f32.mrf.mxu0  ;;  %v703_v20 = vpop.f32.mrf.mxu1 }
 0x163   : > { %v313_v22 = vmax.f32 %v309_v19, 0.0  ;;  %704 = vmatprep.subr.msk.mxu0 %vm392_vm3, %v384_v18 }
 0x164   : > { %v696_v23 = vpop.f32.mrf.mxu0  ;;  %705 = vmatpush3.msk.msra.mxu0 %vm392_vm3, %v384_v18 }
 0x165   : > { %709 = vmatprep.subr.msk.mxu1 %vm392_vm3, %v313_v22  ;;  %707 = vmatmul.mubr.msk.f32.vlgmr.msra.gmra.mxu0 %vm385_vm2, %v238_v21 }
 0x166   : > { %710 = vmatpush3.msk.msra.mxu1 %vm392_vm3, %v313_v22 }
 0x167   : > { %712 = vmatmul.mubr.msk.f32.vlgmr.msra.gmra.mxu1 %vm385_vm2, %v238_v21 }
 0x225   : > { %v708_v25 = vpop.f32.mrf.mxu0 }
 0x227   : > { %v713_v26 = vpop.f32.mrf.mxu1  ;;  %v462_v28 = vpop.f32.mrf.mxu0 }
 0x228   : > { %v546_v27 = vadd.f32 %v713_v26, %v708_v25 }
 0x229   : > { %v540_v29 = vpop.f32.mrf.mxu1 }
 0x22a   : > { %v550_v30 = vsub.f32 0.0, %v546_v27  ;;  %v541_v31 = vadd.f32 %v540_v29, %v462_v28 }
 0x22c   : > { %v553_v32 = vmul.f32 1.442695, %v550_v30  ;;  %v549_v33 = vsub.f32 0.0, %v541_v31 }
 0x22e   : > { %727 = vpow2.f32 %v553_v32  ;;  %v551_v34 = vmul.f32 1.442695, %v549_v33 }
 0x230   : > { %729 = vpow2.f32 %v551_v34 }
 0x23b   : > { %v728_v35 = vpop.eup %727 }
 0x23c   : > { %v556_v36 = vadd.f32 1.0, %v728_v35 }
 0x23d   : > { %v730_v37 = vpop.eup %729 }
 0x23e   : > { %731 = vrcp.f32 %v556_v36  ;;  %v555_v38 = vadd.f32 1.0, %v730_v37 }
 0x240   : > { %733 = vrcp.f32 %v555_v38 }
 0x24b   : > { %v732_v39 = vpop.eup %731 }
 0x24c   : > { %568 = vperm.xlu1 %726, %v732_v39  }
 0x24d   : > { %v734_v40 = vpop.eup %733 }
 0x24e   : > { %563 = vperm.xlu0 %725, %v734_v40  }
 0x2c7   : > { %v569_v43 = vpop.permute.xlu1 %568 }
 0x2c8   : > { %v573_v44 = vmul.f32 %v569_v43, %v785_v0  ;;  %v574_v45 = vmul.f32 %v569_v43, %v787_v1 }
 0x2c9   : > { %v564_v48 = vpop.permute.xlu0 %563 }
 0x2ca   : > { %v581_v49 = vadd.f32 %v577_v41, %v573_v44  ;;  %v582_v50 = vadd.f32 %v578_v42, %v574_v45  ;;  %v571_v51 = vmul.f32 %v564_v48, %v789_v2  ;;  %v572_v52 = vmul.f32 %v564_v48, %v795_v5 }
 0x2cc   : > { %585 = vst [vmem:[%s217_s6 + $0x10] sm:$0xff] %v581_v49  ;;  %586 = vst [vmem:[%s217_s6 + $0x18] sm:$0xff] %v582_v50  ;;  %v579_v53 = vadd.f32 %v575_v46, %v571_v51  ;;  %v580_v54 = vadd.f32 %v576_v47, %v572_v52 }
 0x2ce   : > { %583 = vst [vmem:[%s217_s6] sm:$0xff] %v579_v53  ;;  %584 = vst [vmem:[%s217_s6 + $0x8] sm:$0xff] %v580_v54 }
 0x2cf PF: > { %s14_s15 = sadd.s32 1, %s741_s15  }
 0x2d0   : > { %p11_p4 = scmp.ge.s32.totalorder %s14_s15, 4  }
 0x2d2   :  { %13 = sbr.rel (!%p11_p4) target bundleno = 1 (0x1), region = 69 }

</bundles_post_ra>
